<compile_context>
chip_gen: v6e
topology: v6e:2x2x1
jax: 0.10.0
libtpu: 0.0.40
codegen_flags: <defaults>
</compile_context>

<pallas_src>
import functools
import math

import jax
import jax.numpy as jnp
from jax.experimental import pallas as pl
from jax.experimental.pallas import tpu as pltpu


_HAS_BUFFERED = hasattr(pl, "Buffered")


def _resident_spec(shape, index_map):
    """BlockSpec for a never-changing (constant index_map) block: single-buffered."""
    if _HAS_BUFFERED:
        for make in (lambda: pl.Buffered(buffer_count=1), lambda: pl.Buffered(1)):
            try:
                return pl.BlockSpec(shape, index_map, pipeline_mode=make())
            except (TypeError, ValueError):
                continue
    return pl.BlockSpec(shape, index_map)


def _round_up(a, b):
    return -(-a // b) * b


def _sublanes(dtype):
    it = jnp.dtype(dtype).itemsize
    return max(8, 32 // it)          # 8 for f32, 16 for bf16, 32 for int8


def _padded_block_bytes(rows, cols, dtype):
    """VMEM bytes of one (rows, cols) block after sublane/lane padding."""
    it = jnp.dtype(dtype).itemsize
    r = _round_up(max(int(rows), 1), _sublanes(dtype))
    c = _round_up(max(int(cols), 1), 128)
    return r * c * it


@functools.lru_cache(maxsize=1)
def _vmem_budget_and_limit():
    """(tile budget bytes, vmem_limit_bytes) sized per TPU generation."""
    phys = None
    try:
        phys = int(pltpu.get_tpu_info().vmem_capacity_bytes)
    except Exception:
        pass
    if phys is None:
        try:
            kind = jax.devices()[0].device_kind.lower()
        except Exception:
            kind = ""
        if "v7" in kind or "7x" in kind:
            phys = 64 << 20                       # v7x: 64 MiB per TensorCore
        elif kind:
            phys = 128 << 20                      # v3/v4/v5e/v5p/v6e: 128 MiB
        else:
            phys = 64 << 20                       # unknown: be conservative
    limit = min(phys // 2, 64 << 20)              # scoped limit we request
    budget = (limit * 3) // 4                     # headroom for compiler temporaries
    return budget, limit


def _choose_row_tile(R, N, I, O, stream_dtype, small_bias, do_norm, budget, target):
    """Row tile: multiple of lcm(N, sublanes) so every tile starts at neuron 0 and
    stays sublane-aligned, near `target`, capped by (a) a padded-footprint VMEM
    budget covering the whole pipeline and (b) a >=2-grid-step megacore cap."""
    sub = _sublanes(stream_dtype)
    step = (N * sub) // math.gcd(N, sub)          # lcm(N, sublanes)
    r_up = _round_up(R, step)
    tr = max(step, (int(target) // step) * step)
    tr = min(tr, r_up)
    if r_up >= 2 * step:                          # keep >=2 grid steps (v7x megacore)
        tr = min(tr, _round_up(-(-R // 2), step))

    res_bufs = 1 if _HAS_BUFFERED else 2          # residents: Buffered(1) when available

    def footprint(t):
        f = 2 * _padded_block_bytes(t, I, stream_dtype)           # x stream (2 bufs)
        f += 2 * _padded_block_bytes(t, O, stream_dtype)          # out stream (2 bufs)
        f += res_bufs * _padded_block_bytes(I, O, stream_dtype)   # resident W_eff
        if small_bias:
            f += res_bufs * _padded_block_bytes(N, O, jnp.float32)
        else:
            f += res_bufs * _padded_block_bytes(t, O, jnp.float32)
        if do_norm:
            f += 2 * res_bufs * _padded_block_bytes(1, I, stream_dtype)  # gamma, beta
            f += _padded_block_bytes(t, I, jnp.float32)           # f32 LN temporaries
        return f

    while tr > step and footprint(tr) > budget:
        tr -= step
    return tr


def _make_kernel(do_norm, small_bias, N):
    """Kernel body. All flags are static Python values."""

    def _finish(acc, b_ref, o_ref):
        if small_bias:
            TR, O = acc.shape
            # tr % N == 0 and N % 8 == 0 (f32 acc sublanes) => layout-free reshape.
            acc = (acc.reshape(TR // N, N, O) + b_ref[...]).reshape(TR, O)
        else:
            acc = acc + b_ref[...]
        o_ref[...] = acc.astype(o_ref.dtype)

    if do_norm:
        def kernel(x_ref, w_ref, b_ref, g_ref, be_ref, o_ref):
            xf = x_ref[...].astype(jnp.float32)                    # (TR, I) f32 LN math
            mean = jnp.mean(xf, axis=-1, keepdims=True)
            var = jnp.mean(xf * xf, axis=-1, keepdims=True) - mean * mean
            xn = (xf - mean) * jax.lax.rsqrt(var + 1e-5)
            xn = xn * g_ref[...].astype(jnp.float32) + be_ref[...].astype(jnp.float32)
            lhs = xn if x_ref.dtype == jnp.float32 else xn.astype(x_ref.dtype)
            acc = jnp.dot(lhs, w_ref[...],
                          preferred_element_type=jnp.float32)      # (TR, O) MXU, f32 acc
            _finish(acc, b_ref, o_ref)
        return kernel

    def kernel(x_ref, w_ref, b_ref, o_ref):
        acc = jnp.dot(x_ref[...], w_ref[...],
                      preferred_element_type=jnp.float32)           # (TR, O) MXU, f32 acc
        _finish(acc, b_ref, o_ref)
    return kernel


def superlinear_precompute(w1, b1, T):
    """Fold the g-sum and temperature once (f32). Hoist this outside the CTM tick
    loop and reuse the result with `superlinear_apply`."""
    I, O, N = w1.shape
    assert b1.shape == (1, N, O), (b1.shape, (1, N, O))
    t = jnp.asarray(T, jnp.float32)
    w_eff = jnp.sum(w1.astype(jnp.float32), axis=2) * t             # (I, O) f32
    b_no = b1.reshape(N, O).astype(jnp.float32) * t                 # (N, O) f32
    return w_eff, b_no


def superlinear_apply(x, w_eff, b_no, gamma=None, beta=None, do_norm=False,
                      row_tile=2048, stream_dtype=None):
    """x: (B, N, in_dims); w_eff: (in_dims, out_dims) f32; b_no: (N, out_dims) f32."""
    B, N, I = x.shape
    Iw, O = w_eff.shape
    assert Iw == I and b_no.shape == (N, O)
    R = B * N

    if stream_dtype is not None and x.dtype != jnp.dtype(stream_dtype):
        # NOTE: an explicit cast is an extra HBM pass unless fused with the producer;
        # prefer handing bf16 x in from upstream.
        x = x.astype(stream_dtype)
    dt = x.dtype
    w = w_eff.astype(dt)          # g-sum/T stay f32; single cast to the streamed dtype

    budget, vmem_limit = _vmem_budget_and_limit()
    small_bias = (N % 8 == 0)     # f32 accumulator sublanes => layout-free reshape
    tr = _choose_row_tile(R, N, I, O, dt, small_bias, do_norm, budget, row_tile)

    x2 = x.reshape(R, I)                         # free bitcast
    grid = (pl.cdiv(R, tr),)                     # partial last tile handled by Pallas

    in_specs = [pl.BlockSpec((tr, I), lambda i: (i, 0)),     # x rows (double-buffered)
                _resident_spec((I, O), lambda i: (0, 0))]    # W_eff*T (resident, 1 buf)
    args = [x2, w]

    if small_bias:
        in_specs.append(_resident_spec((N, O), lambda i: (0, 0)))   # per-neuron bias*T
        args.append(b_no)
    else:
        b_tile = jnp.tile(b_no, (tr // N, 1))                        # fallback (tr, O)
        in_specs.append(_resident_spec((tr, O), lambda i: (0, 0)))
        args.append(b_tile)

    if do_norm:
        gamma = jnp.ones((I,), dt) if gamma is None else jnp.asarray(gamma, dt)
        beta = jnp.zeros((I,), dt) if beta is None else jnp.asarray(beta, dt)
        in_specs += [_resident_spec((1, I), lambda i: (0, 0)),
                     _resident_spec((1, I), lambda i: (0, 0))]
        args += [gamma.reshape(1, I), beta.reshape(1, I)]

    out2 = pl.pallas_call(
        _make_kernel(do_norm, small_bias, N),
        out_shape=jax.ShapeDtypeStruct((R, O), dt),
        grid=grid,
        in_specs=in_specs,
        out_specs=pl.BlockSpec((tr, O), lambda i: (i, 0)),
        compiler_params=pltpu.CompilerParams(
            dimension_semantics=("parallel",),   # megacore-shardable row axis
            vmem_limit_bytes=int(vmem_limit)),
    )(*args)

    out = out2.reshape(B, N, O)                  # free bitcast
    if O == 1:
        out = jnp.squeeze(out, axis=-1)
    return out


def superlinear_forward(x, w1, b1, T, gamma=None, beta=None, do_norm=False,
                        row_tile=2048, stream_dtype=None):
    """Convenience wrapper: precompute + apply in one call.
    For repeated CTM ticks, call `superlinear_precompute` once and reuse it."""
    w_eff, b_no = superlinear_precompute(w1, b1, T)
    return superlinear_apply(x, w_eff, b_no, gamma=gamma, beta=beta,
                             do_norm=do_norm, row_tile=row_tile,
                             stream_dtype=stream_dtype)


def superlinear_ref(x, w1, b1, T, gamma=None, beta=None, do_norm=False):
    """Pure-JAX reference matching the torch forward exactly."""
    if do_norm:
        mean = jnp.mean(x, axis=-1, keepdims=True)
        var = jnp.var(x, axis=-1, keepdims=True)     # biased, as torch LayerNorm
        x = (x - mean) / jnp.sqrt(var + 1e-5)
        if gamma is not None:
            x = x * gamma
        if beta is not None:
            x = x + beta
    out = jnp.einsum('bni,iog->bno', x, w1) + b1
    out = out * T
    if out.shape[-1] == 1:
        out = jnp.squeeze(out, axis=-1)
    return out


if __name__ == "__main__":
    key = jax.random.PRNGKey(0)

    def make_inputs(k, B, N, I, O):
        kx, kw, kb = jax.random.split(k, 3)
        bound = math.sqrt(1.0 / (I + O))
        x = jax.random.normal(kx, (B, N, I), jnp.float32)
        w1 = jax.random.uniform(kw, (I, O, N), jnp.float32, minval=-bound, maxval=bound)
        b1 = jax.random.uniform(kb, (1, N, O), jnp.float32, minval=-bound, maxval=bound)
        return x, w1, b1

    ks = jax.random.split(key, 8)

    # 1) plain path: B=2, N=8, in=32, out=16; small row tile -> 2-step grid,
    #    small-bias broadcast path.
    x, w1, b1 = make_inputs(ks[0], 2, 8, 32, 16)
    out = jax.block_until_ready(superlinear_forward(x, w1, b1, 1.0, row_tile=8))
    ref = superlinear_ref(x, w1, b1, 1.0)
    assert out.shape == ref.shape, (out.shape, ref.shape)
    assert jnp.allclose(out, ref, atol=5e-5, rtol=5e-5), \
        float(jnp.max(jnp.abs(out - ref)))

    # 2) out_dims=1 squeeze path with a non-trivial (binary-exact) temperature.
    x, w1, b1 = make_inputs(ks[1], 4, 16, 64, 1)
    out = jax.block_until_ready(superlinear_forward(x, w1, b1, 0.5, row_tile=32))
    ref = superlinear_ref(x, w1, b1, 0.5)
    assert out.shape == ref.shape == (4, 16), (out.shape, ref.shape)
    assert jnp.allclose(out, ref, atol=5e-5, rtol=5e-5), \
        float(jnp.max(jnp.abs(out - ref)))

    # 3) LayerNorm path (do_norm=True) with affine params.
    x, w1, b1 = make_inputs(ks[2], 2, 8, 32, 16)
    gamma = 1.0 + 0.1 * jax.random.normal(ks[3], (32,), jnp.float32)
    beta = 0.05 * jnp.ones((32,), jnp.float32)
    out = jax.block_until_ready(
        superlinear_forward(x, w1, b1, 1.0, gamma=gamma, beta=beta,
                            do_norm=True, row_tile=8))
    ref = superlinear_ref(x, w1, b1, 1.0, gamma=gamma, beta=beta, do_norm=True)
    assert out.shape == ref.shape, (out.shape, ref.shape)
    assert jnp.allclose(out, ref, atol=1e-4, rtol=1e-4), \
        float(jnp.max(jnp.abs(out - ref)))

    # 4) bf16 streaming (bandwidth path); f32 accumulation on the MXU.
    x, w1, b1 = make_inputs(ks[4], 4, 16, 32, 16)
    out = superlinear_forward(x.astype(jnp.bfloat16), w1, b1, 1.0, row_tile=32)
    out = jax.block_until_ready(out).astype(jnp.float32)
    ref = superlinear_ref(x, w1, b1, 1.0)
    assert out.shape == ref.shape, (out.shape, ref.shape)
    assert jnp.allclose(out, ref, atol=1e-1, rtol=1e-1), \
        float(jnp.max(jnp.abs(out - ref)))

    # 5) N not a multiple of 8 -> tiled-bias fallback path.
    x, w1, b1 = make_inputs(ks[5], 4, 12, 32, 16)
    out = jax.block_until_ready(superlinear_forward(x, w1, b1, 2.0, row_tile=24))
    ref = superlinear_ref(x, w1, b1, 2.0)
    assert out.shape == ref.shape, (out.shape, ref.shape)
    assert jnp.allclose(out, ref, atol=1e-4, rtol=1e-4), \
        float(jnp.max(jnp.abs(out - ref)))

    # 6) partial last tile (R=24, tile=16) + LayerNorm: padded rows are masked
    #    out of the write-back, so any garbage/NaN in them is harmless.
    x, w1, b1 = make_inputs(ks[6], 3, 8, 32, 16)
    out = jax.block_until_ready(
        superlinear_forward(x, w1, b1, 1.0, do_norm=True, row_tile=16))
    ref = superlinear_ref(x, w1, b1, 1.0, do_norm=True)
    assert out.shape == ref.shape, (out.shape, ref.shape)
    assert jnp.allclose(out, ref, atol=1e-4, rtol=1e-4), \
        float(jnp.max(jnp.abs(out - ref)))

    print("KERNEL_OK")
</pallas_src>

<mosaic_0001>
module attributes {stable_mosaic.version = 11 : i64} {
  func.func @kernel(%arg0: i32, %arg1: memref<8x32xf32, #tpu.memory_space<vmem>>, %arg2: memref<32x16xf32, #tpu.memory_space<vmem>>, %arg3: memref<8x16xf32, #tpu.memory_space<vmem>>, %arg4: memref<8x16xf32, #tpu.memory_space<vmem>>) attributes {dimension_semantics = [#tpu.dimension_semantics<parallel>], iteration_bounds = array<i64: 2>, scalar_prefetch = 0 : i64, scratch_operands = 0 : i64, tpu.core_type = #tpu.core_type<tc>, window_params = [{transform_indices = @transform_0, window_bounds = array<i64: 8, 32>}, {pipeline_mode = #tpu.pipeline_mode<synchronous>, transform_indices = @transform_1, window_bounds = array<i64: 32, 16>}, {pipeline_mode = #tpu.pipeline_mode<synchronous>, transform_indices = @transform_2, window_bounds = array<i64: 8, 16>}, {transform_indices = @transform_3, window_bounds = array<i64: 8, 16>}]} {
    %c0 = arith.constant 0 : index
    %c0_0 = arith.constant 0 : index
    %0 = vector.load %arg1[%c0, %c0_0] : memref<8x32xf32, #tpu.memory_space<vmem>>, vector<8x32xf32>
    %c0_1 = arith.constant 0 : index
    %c0_2 = arith.constant 0 : index
    %1 = vector.load %arg2[%c0_1, %c0_2] : memref<32x16xf32, #tpu.memory_space<vmem>>, vector<32x16xf32>
    %cst = arith.constant dense<0.000000e+00> : vector<8x16xf32>
    %2 = tpu.matmul %0, %1, %cst {dimension_numbers = #tpu.dot_dimension_numbers<[1], [0], [0], [1], [0, 0, 1, 1], [], []>} : vector<8x32xf32>, vector<32x16xf32>, vector<8x16xf32> -> vector<8x16xf32>
    %3 = vector.shape_cast %2 : vector<8x16xf32> to vector<1x8x16xf32>
    %c0_3 = arith.constant 0 : index
    %c0_4 = arith.constant 0 : index
    %4 = vector.load %arg3[%c0_3, %c0_4] : memref<8x16xf32, #tpu.memory_space<vmem>>, vector<8x16xf32>
    %5 = vector.shape_cast %4 : vector<8x16xf32> to vector<1x8x16xf32>
    %6 = arith.addf %3, %5 : vector<1x8x16xf32>
    %7 = vector.shape_cast %6 : vector<1x8x16xf32> to vector<8x16xf32>
    %c0_5 = arith.constant 0 : index
    %c0_6 = arith.constant 0 : index
    %8 = vector.load %arg4[%c0_5, %c0_6] : memref<8x16xf32, #tpu.memory_space<vmem>>, vector<8x16xf32>
    tpu.vector_store %arg4[%c0_5, %c0_6], %7 {strides = array<i32>} : memref<8x16xf32, #tpu.memory_space<vmem>>, vector<8x16xf32>,
    return
  }
  func.func @transform_0(%arg0: i32) -> (i32, i32) {
    %c0_i32 = arith.constant 0 : i32
    %c0_i32_0 = arith.constant 0 : i32
    return %arg0, %c0_i32 : i32, i32
  }
  func.func @transform_1(%arg0: i32) -> (i32, i32) {
    %c0_i32 = arith.constant 0 : i32
    %c0_i32_0 = arith.constant 0 : i32
    %c0_i32_1 = arith.constant 0 : i32
    return %c0_i32, %c0_i32_0 : i32, i32
  }
  func.func @transform_2(%arg0: i32) -> (i32, i32) {
    %c0_i32 = arith.constant 0 : i32
    %c0_i32_0 = arith.constant 0 : i32
    %c0_i32_1 = arith.constant 0 : i32
    return %c0_i32, %c0_i32_0 : i32, i32
  }
  func.func @transform_3(%arg0: i32) -> (i32, i32) {
    %c0_i32 = arith.constant 0 : i32
    %c0_i32_0 = arith.constant 0 : i32
    return %arg0, %c0_i32 : i32, i32
  }
}

</mosaic_0001>

<bundles_post_ra>
// kernel: tpu_custom_call.1
= control target key start
LH: loop header
LB: loop body
LE: loop exit
PB: predicated region body
PF: predicated region fallthrough
CT: control target
= control target key end

     0   :  { %8 = vsyncpa [#allocation3], 0  ;;  %s583_s0 = inlined_call_operand.vmem [shape: f32[16,32], index: 0, kind: input, shape index: {}]   ;;  %s584_s1 = inlined_call_operand.vmem [shape: f32[32,16], index: 1, kind: input, shape index: {}]   ;;  %s585_s2 = inlined_call_operand.vmem [shape: f32[8,16], index: 2, kind: input, shape index: {}]   ;;  %s586_s3 = inlined_call_operand.hbm [shape: f32[16,16], index: 3, kind: output, shape index: {}]  }
   0x1   :  { %10 = vsyncpa [#allocation3 + $0x1], 0  ;;  %s475_s12 = smov 0   ;;  %s477_s13 = smov 0  }
   0x2   :  { %s479_s14 = smov 0   ;;  %s481_s15 = smov 0  }
   0x3 LB: > { %s496_s16 = sadd.s32 4294967295, %s450_s15   ;;  %s322_s17 = sadd.s32 4294967294, %s450_s15   ;;  %s450_s15 = sphi %s481_s15, %s592_s15   ;;  %s446_s14 = sphi %s479_s14, %s591_s14   ;;  %s442_s13 = sphi %s477_s13, %s590_s13   ;;  %s438_s12 = sphi %s475_s12, %s589_s12  }
   0x4   : > { %s500_s18 = sadd.s32 1, %s450_s15   ;;  %s91_s19 = sadd.s32 1, %s446_s14 }
   0x5   : > { %s88_s20 = ssub.s32 %s450_s15, %s500_s18  ;;  %p101_p0 = scmp.ne.s32.totalorder %s446_s14, %s442_s13 }
   0x6   : > { %p89_p1 = scmp.eq.s32.totalorder %s88_s20, 0  ;;  %p102_p2 = scmp.eq.s32.totalorder %s496_s16, 1 }
   0x7   : > { %p107_p3 = scmp.ne.s32.totalorder %s442_s13, %s438_s12  ;;  %p108_p4 = scmp.eq.s32.totalorder %s322_s17, 1 }
   0x8   : > { %s511_s21 = scalar_select %p89_p1, %s446_s14, %s91_s19  }
   0x9   : > { %p513_p5 = por %p102_p2, %p101_p0  ;;  %p517_p6 = por %p108_p4, %p107_p3 }
   0xa   : > { %p325_p7 = scmp.ge.s32.totalorder %s450_s15, 1  ;;  %p139_p8 = scmp.lt.s32.totalorder %s450_s15, 3 }
   0xc   : > { %p140_p9 = pnand %p325_p7, %p139_p8 }
   0xd   : > { %p162_p10 = scmp.lt.s32.totalorder (!%p140_p9), %s496_s16, 1  ;;  %s159_s10 = sand.u32 (!%p140_p9), 1, %s442_s13  }
   0xe   : > { %143 = sbr.rel (%p140_p9) target bundleno = 236 (0xec), region = 32  ;;  %s326_s11 = sshll.u32 (!%p140_p9), %s159_s10, 3 }
   0xf   : > { %s330_s20 = sshll.u32 (!%p140_p9), %s496_s16, 7  ;;  %s161_s24 = scalar_lea.vmem (!%p140_p9), [#allocation2], %s326_s11 }
  0x10   : > { %s263_s25 = sshll.u32 (!%p140_p9), %s161_s24, 4  ;;  %s250_s29 = scalar_lea.sflag (!%p140_p9), [#allocation3], %s159_s10  ;;  %s264_s25 = int_to_ptr.vmem [resolvable:$true] %s263_s25 }
  0x11   : > { %s390_s30 = scalar_lea.vmem (!%p140_p9), %s264_s25, 128 }
  0x12   : > { %p391_p11 = scmp.ne.s32.totalorder (!%p140_p9), %s264_s25, %s390_s30 }
  0x13   : > { %v170_v0 = vld [vmem:[%s584_s1 + $0x18] sm:$0xff]  ;;  %v452_v1 = vmov 0.0   ;;  %v169_v2 = vld [vmem:[%s584_s1 + $0x10] sm:$0xff]  ;;  %vm453_vm0 = vmmov 0   ;;  %s163_s28 = scalar_select %p162_p10, %s496_s16, 1  ;;  %v168_v3 = vld [vmem:[%s584_s1 + $0x8] sm:$0xff] }
  0x14   : > { %338 = vmatprep.subr.mxu0 %v452_v1  ;;  %346 = vmatprep.mubr.msk.f32.mxu0 %vm453_vm0, %v452_v1  ;;  %v167_v4 = vld [vmem:[%s584_s1] sm:$0xff]  ;;  %vm171_vm1 = vcmask 261120   ;;  %vm247_vm2 = vcmask 130048   ;;  %p392_p12 = pnand %p391_p11, %p513_p5  ;;  %s454_s16 = smov [#allocation2]  }
  0x15   : > { %339 = vmatpush3.msra.mxu0 %v170_v0  ;;  %s327_s4 = sshll.u32 %s163_s28, 3  ;;  %v245_v6 = vld [vmem:[%s585_s2] sm:$0xff]  ;;  %s548_s28 = scalar_lea.hbm %s586_s3, %s330_s20 }
  0x16   : > { %340 = vmatprep.subr.mxu0 %v452_v1  ;;  %s165_s9 = scalar_lea.vmem %s583_s0, %s327_s4  ;;  %p393_p13 = pneg %p392_p12 }
  0x17   : > { %341 = vmatpush3.msra.mxu0 %v169_v2  ;;  %v166_v5 = vld [vmem:[%s165_s9] sm:$0xff]  ;;  %s394_s4 = sshll.u32 %s454_s16, 4  ;;  %s395_s4 = int_to_ptr.vmem [resolvable:$false] %s394_s4 }
  0x18   : > { %342 = vmatprep.subr.mxu0 %v452_v1  ;;  %s396_s5 = scalar_lea.vmem %s395_s4, 256  ;;  %p397_p0 = scmp.lt.s32.totalorder %s264_s25, %s395_s4 }
  0x19   : > { %343 = vmatpush3.msra.mxu0 %v168_v3  ;;  %p398_p1 = scmp.lt.s32.totalorder %s396_s5, %s390_s30 }
  0x1a   : > { %344 = vmatprep.subr.mxu0 %v452_v1 }
  0x1b   : > { %345 = vmatpush3.msra.mxu0 %v167_v4  ;;  %p399_p2 = por %p398_p1, %p397_p0 }
  0x1c   : > { %347 = vmatmul.mubr.msk.f32.vlgmr.msra.gmra.mxu0 %vm171_vm1, %v166_v5 }
  0x1d   : > { %p400_p3 = pnand %p399_p2, %p393_p13 }
  0xdc   : > { %v241_v7 = vpop.f32.mrf.mxu0 }
  0xdd   : > { %v246_v8 = vadd.f32 %v245_v6, %v241_v7 }
  0xde   : > { %v348_v9 = vpop.f32.mrf.mxu0 }
  0xdf   : > { %248 = vst.msk [vmem:[%s161_s24] sm:$0xff] %vm247_vm2, %v246_v8 }
  0xe0   : > { %403 = shalt.err (!%p400_p3)
}
  0xe1   : > { %s404_s6 = scalar_lea.hbm %s548_s28, 128  ;;  %s408_s9 = scalar_lea.hbm %s586_s3, 256 }
  0xe2   : > { %p405_p4 = scmp.ne.s32.totalorder %s548_s28, %s404_s6  ;;  %p409_p9 = scmp.lt.s32.totalorder %s548_s28, %s586_s3 }
  0xe3   : > { %p410_p10 = scmp.lt.s32.totalorder %s408_s9, %s404_s6 }
  0xe4   : > { %p406_p7 = pnand %p405_p4, %p513_p5 }
  0xe5   : > { %p411_p11 = por %p410_p10, %p409_p9 }
  0xe6   : > { %p407_p8 = pneg %p406_p7 }
  0xe8   : > { %p412_p12 = pnand %p411_p11, %p407_p8 }
  0xea   : > { %415 = shalt.err (!%p412_p12)
}
  0xeb   : > { %349 = dma.vmem_to_hbm [thread:$0]  (%p513_p5), %s264_s25, 128, %s548_s28, %s250_s29  }
  0xec PF: > { %p355_p13 = scmp.ge.s32.totalorder %s450_s15, 2  ;;  %s275_s17 = sand.u32 1, %s438_s12  }
  0xed   : > { %s276_s19 = scalar_lea.sflag [#allocation3], %s275_s17 }
  0xee   : > { %p352_p0 = pnand %p355_p13, %p517_p6 }
  0xf0   : > { %p353_p1 = pneg %p352_p0 }
  0xf2   : > { %433 = dma.done.wait (%p353_p1), %s276_s19, 128  }
  0xf3   : > { %435 = vsyncadd (%p353_p1), %s276_s19, 4294967168  ;;  %p13_p2 = scmp.ge.s32.totalorder %s500_s18, 4   ;;  %s589_s12 = smov %s442_s13 }
  0xf4   : > { %s590_s13 = smov %s446_s14  ;;  %s591_s14 = smov %s511_s21 }
  0xf5   : > { %s592_s15 = smov %s500_s18  ;;  %15 = sbr.rel (!%p13_p2) target bundleno = 3 (0x3), region = 67 }
  0xfa   :  { %281 = vsyncpa [#allocation3], 1 }
  0xfb   :  { %283 = vsyncpa [#allocation3 + $0x1], 1 }

</bundles_post_ra>
